<compile_context>
chip_gen: v7x
topology: tpu7x:2x2x1
jax: 0.10.0
libtpu: 0.0.40
codegen_flags: <defaults>
</compile_context>

<pallas_src>
import functools

import jax
import jax.numpy as jnp
from jax import lax
from jax.experimental import pallas as pl
from jax.experimental.pallas import tpu as pltpu

EPS = 1e-5
_LANE = 128
_SUB_CHUNK_BYTES = 128 * 1024  # target live f32 bytes per in-kernel row sub-chunk


def _round_up(x, m):
    return ((x + m - 1) // m) * m


def _tpu_generation():
    try:
        kind = jax.devices()[0].device_kind.lower()
    except Exception:
        return 0
    for g in (7, 6, 5, 4):
        if f"v{g}" in kind:
            return g
    return 0


def _default_block_bytes():
    # v5e/v6e: 128 MiB VMEM -> bigger blocks amortize per-step overhead.
    # v7x (or unknown): 64 MiB VMEM -> stay at 4 MiB (tile curve plateaus there).
    return (8 << 20) if _tpu_generation() in (5, 6) else (4 << 20)


def _vmem_cap():
    return (64 << 20) if _tpu_generation() in (5, 6) else (48 << 20)


# --------------------------- fast path (hw on lanes) ---------------------------

def _fused_norm_kernel(x_ref, o_ref, *, inv_hw, sub, n_sub):
    """One (row_tile, hw) block; each row normalized over the full lane axis.

    Rows are streamed in `sub`-row chunks so the f32 working set stays small
    (no block-sized spill buffer).  Two-pass mean/variance per row chunk.
    """

    def _norm(x):
        x = x.astype(jnp.float32)
        mean = jnp.sum(x, axis=-1, keepdims=True) * inv_hw
        d = x - mean
        var = jnp.sum(d * d, axis=-1, keepdims=True) * inv_hw  # biased variance
        return d * lax.rsqrt(var + EPS)

    if n_sub == 1:
        o_ref[...] = _norm(x_ref[...]).astype(o_ref.dtype)
    else:
        def body(j, carry):
            r = pl.multiple_of(j * sub, sub)
            o_ref[pl.ds(r, sub), :] = _norm(x_ref[pl.ds(r, sub), :]).astype(o_ref.dtype)
            return carry

        lax.fori_loop(0, n_sub, body, 0, unroll=(n_sub <= 8))


# ----------------------- fallback path (hw tiled, 2 passes) ---------------------

def _stats_kernel(x_ref, s1_ref, s2_ref, *, hw, hw_tile):
    k = pl.program_id(1)

    @pl.when(k == 0)
    def _():
        s1_ref[...] = jnp.zeros_like(s1_ref)
        s2_ref[...] = jnp.zeros_like(s2_ref)

    x = x_ref[...].astype(jnp.float32)
    # Mask lanes past the end of the plane (partial last HW block reads garbage).
    lane = lax.broadcasted_iota(jnp.int32, x.shape, 1) + k * hw_tile
    x = jnp.where(lane < hw, x, 0.0)
    s1_ref[...] += jnp.sum(x, axis=-1, keepdims=True)
    s2_ref[...] += jnp.sum(x * x, axis=-1, keepdims=True)


def _apply_norm_kernel(x_ref, s1_ref, s2_ref, o_ref, *, inv_hw):
    x = x_ref[...].astype(jnp.float32)
    mean = s1_ref[...] * inv_hw
    var = jnp.maximum(s2_ref[...] * inv_hw - mean * mean, 0.0)
    o_ref[...] = ((x - mean) * lax.rsqrt(var + EPS)).astype(o_ref.dtype)


# ----------------------------------- wrapper ------------------------------------

@functools.partial(jax.jit, static_argnames=("block_bytes",))
def sequence_instance_norm_2d(v, *, block_bytes=None):
    """v: (B, S, C, H, W) -> (B, S, C, H, W), matching SequenceInstanceNorm2d."""
    B, S, C, H, W = v.shape
    rows, hw = B * S * C, H * W

    if block_bytes is None:
        block_bytes = _default_block_bytes()
    block_bytes = max(int(block_bytes), 64 * 1024)

    in_dtype = v.dtype
    out_dtype = in_dtype if jnp.issubdtype(in_dtype, jnp.floating) else jnp.float32
    itemsize = jnp.dtype(in_dtype).itemsize
    out_itemsize = jnp.dtype(out_dtype).itemsize
    sublane = max(8, 32 // itemsize)        # packed sublanes per vreg for this dtype
    hw_pad = _round_up(hw, _LANE)           # actual per-row lane footprint in VMEM
    inv_hw = 1.0 / hw

    x2d = v.reshape(rows, hw)
    vmem_cap = _vmem_cap()

    if sublane * hw_pad * itemsize <= block_bytes:
        # ---------------- fast path: whole H*W plane on the lane axis ----------------
        sub = max(sublane,
                  min((_SUB_CHUNK_BYTES // (hw_pad * 4)) // sublane * sublane, 1024))
        if rows <= sub:
            row_tile, sub, n_sub = rows, rows, 1          # single full-extent block
        else:
            budget_rows = max(sub, (block_bytes // (hw_pad * itemsize)) // sub * sub)
            half_rows = _round_up((rows + 1) // 2, sub)   # >=2 blocks for dual-TC v7x
            row_tile = max(sub, min(budget_rows, half_rows, (rows // sub) * sub))
            n_sub = row_tile // sub

        blk_in = row_tile * hw_pad * itemsize
        blk_out = row_tile * hw_pad * out_itemsize
        vmem_limit = int(min(max(2 * blk_in + 2 * blk_out + 2 * sub * hw_pad * 4
                                 + (2 << 20), 16 << 20), vmem_cap))

        out2d = pl.pallas_call(
            functools.partial(_fused_norm_kernel, inv_hw=inv_hw, sub=sub, n_sub=n_sub),
            out_shape=jax.ShapeDtypeStruct((rows, hw), out_dtype),
            grid_spec=pltpu.PrefetchScalarGridSpec(
                num_scalar_prefetch=0,
                grid=(pl.cdiv(rows, row_tile),),
                in_specs=[pl.BlockSpec((row_tile, hw), lambda i: (i, 0))],
                out_specs=pl.BlockSpec((row_tile, hw), lambda i: (i, 0)),
            ),
            compiler_params=pltpu.CompilerParams(
                dimension_semantics=("parallel",),
                vmem_limit_bytes=vmem_limit,
            ),
        )(x2d)
    else:
        # ------------- fallback: H*W too large for one lane-resident block -------------
        # Pass 1 tiles the plane along HW (reduction axis last, "arbitrary") and
        # accumulates per-row sum / sum-of-squares in f32; pass 2 re-streams x and
        # applies (x - mean) * rsqrt(var + eps) with the per-row stats broadcast.
        r_fb = rows if rows < sublane else sublane
        hw_tile = max(_LANE, (block_bytes // (sublane * itemsize)) // _LANE * _LANE)
        n_r = pl.cdiv(rows, r_fb)
        n_k = pl.cdiv(hw, hw_tile)

        pad_rows = max(r_fb, sublane)
        blk_in = pad_rows * hw_tile * itemsize
        blk_out = pad_rows * hw_tile * out_itemsize
        blk_f32 = pad_rows * hw_tile * 4      # in-kernel f32 compute temporary
        vmem_limit = int(min(max(2 * blk_in + 2 * blk_out + 2 * blk_f32 + (2 << 20),
                                 16 << 20), vmem_cap))

        s1, s2 = pl.pallas_call(
            functools.partial(_stats_kernel, hw=hw, hw_tile=hw_tile),
            out_shape=(jax.ShapeDtypeStruct((rows, 1), jnp.float32),
                       jax.ShapeDtypeStruct((rows, 1), jnp.float32)),
            grid_spec=pltpu.PrefetchScalarGridSpec(
                num_scalar_prefetch=0,
                grid=(n_r, n_k),
                in_specs=[pl.BlockSpec((r_fb, hw_tile), lambda i, k: (i, k))],
                out_specs=[pl.BlockSpec((r_fb, 1), lambda i, k: (i, 0)),
                           pl.BlockSpec((r_fb, 1), lambda i, k: (i, 0))],
            ),
            compiler_params=pltpu.CompilerParams(
                dimension_semantics=("parallel", "arbitrary"),
                vmem_limit_bytes=vmem_limit,
            ),
        )(x2d)

        out2d = pl.pallas_call(
            functools.partial(_apply_norm_kernel, inv_hw=inv_hw),
            out_shape=jax.ShapeDtypeStruct((rows, hw), out_dtype),
            grid_spec=pltpu.PrefetchScalarGridSpec(
                num_scalar_prefetch=0,
                grid=(n_r, n_k),
                in_specs=[pl.BlockSpec((r_fb, hw_tile), lambda i, k: (i, k)),
                          pl.BlockSpec((r_fb, 1), lambda i, k: (i, 0)),
                          pl.BlockSpec((r_fb, 1), lambda i, k: (i, 0))],
                out_specs=pl.BlockSpec((r_fb, hw_tile), lambda i, k: (i, k)),
            ),
            compiler_params=pltpu.CompilerParams(
                dimension_semantics=("parallel", "parallel"),
                vmem_limit_bytes=vmem_limit,
            ),
        )(x2d, s1, s2)

    return out2d.reshape(B, S, C, H, W)


def _reference(v):
    # Pure-JAX reference of InstanceNorm2d over the folded (B*S, C, H, W).
    x = v.astype(jnp.float32)
    mean = jnp.mean(x, axis=(-2, -1), keepdims=True)
    var = jnp.mean((x - mean) ** 2, axis=(-2, -1), keepdims=True)
    return ((x - mean) / jnp.sqrt(var + EPS)).astype(v.dtype)


if __name__ == "__main__":
    key = jax.random.PRNGKey(0)
    k1, k2 = jax.random.split(key)

    # Main (fast-path) case: embed_dim = C = 4.
    B, S, C, H, W = 2, 8, 4, 16, 16
    v = jax.random.normal(k1, (B, S, C, H, W), dtype=jnp.float32)
    out = jax.block_until_ready(sequence_instance_norm_2d(v))
    assert out.shape == (B, S, C, H, W) and out.dtype == v.dtype
    assert jnp.allclose(out, _reference(v), atol=1e-4, rtol=1e-4)

    # Exercise the HW-tiled fallback path (forced with a small block budget).
    v2 = jax.random.normal(k2, (1, 2, 4, 48, 48), dtype=jnp.float32)
    out2 = jax.block_until_ready(sequence_instance_norm_2d(v2, block_bytes=64 * 1024))
    assert jnp.allclose(out2, _reference(v2), atol=1e-4, rtol=1e-4)

    print("KERNEL_OK")
</pallas_src>

<mosaic_0001>
module attributes {stable_mosaic.version = 11 : i64} {
  func.func @_fused_norm_kernel(%arg0: i32, %arg1: memref<64x256xf32, #tpu.memory_space<vmem>>, %arg2: memref<64x256xf32, #tpu.memory_space<vmem>>) attributes {dimension_semantics = [#tpu.dimension_semantics<parallel>], iteration_bounds = array<i64: 1>, scalar_prefetch = 0 : i64, scratch_operands = 0 : i64, tpu.core_type = #tpu.core_type<tc>, window_params = [{transform_indices = @transform_0, window_bounds = array<i64: 64, 256>}, {transform_indices = @transform_1, window_bounds = array<i64: 64, 256>}]} {
    %c0 = arith.constant 0 : index
    %c0_0 = arith.constant 0 : index
    %0 = vector.load %arg1[%c0, %c0_0] : memref<64x256xf32, #tpu.memory_space<vmem>>, vector<64x256xf32>
    %cst = arith.constant dense<0.000000e+00> : vector<64xf32>
    %1 = vector.multi_reduction <add>, %0, %cst [1] : vector<64x256xf32> to vector<64xf32>
    %2 = vector.shape_cast %1 : vector<64xf32> to vector<64x1xf32>
    %cst_1 = arith.constant 3.906250e-03 : f32
    %3 = vector.broadcast %cst_1 : f32 to vector<64x1xf32>
    %4 = arith.mulf %2, %3 : vector<64x1xf32>
    %5 = vector.broadcast %4 : vector<64x1xf32> to vector<64x256xf32>
    %6 = arith.subf %0, %5 : vector<64x256xf32>
    %7 = arith.mulf %6, %6 : vector<64x256xf32>
    %cst_2 = arith.constant dense<0.000000e+00> : vector<64xf32>
    %8 = vector.multi_reduction <add>, %7, %cst_2 [1] : vector<64x256xf32> to vector<64xf32>
    %9 = vector.shape_cast %8 : vector<64xf32> to vector<64x1xf32>
    %cst_3 = arith.constant 3.906250e-03 : f32
    %10 = vector.broadcast %cst_3 : f32 to vector<64x1xf32>
    %11 = arith.mulf %9, %10 : vector<64x1xf32>
    %cst_4 = arith.constant 9.99999974E-6 : f32
    %12 = vector.broadcast %cst_4 : f32 to vector<64x1xf32>
    %13 = arith.addf %11, %12 : vector<64x1xf32>
    %14 = math.rsqrt %13 : vector<64x1xf32>
    %15 = vector.broadcast %14 : vector<64x1xf32> to vector<64x256xf32>
    %16 = arith.mulf %6, %15 : vector<64x256xf32>
    %c0_5 = arith.constant 0 : index
    %c0_6 = arith.constant 0 : index
    %17 = vector.load %arg2[%c0_5, %c0_6] : memref<64x256xf32, #tpu.memory_space<vmem>>, vector<64x256xf32>
    tpu.vector_store %arg2[%c0_5, %c0_6], %16 {strides = array<i32>} : memref<64x256xf32, #tpu.memory_space<vmem>>, vector<64x256xf32>,
    return
  }
  func.func @transform_0(%arg0: i32) -> (i32, i32) {
    %c0_i32 = arith.constant 0 : i32
    %c0_i32_0 = arith.constant 0 : i32
    return %arg0, %c0_i32 : i32, i32
  }
  func.func @transform_1(%arg0: i32) -> (i32, i32) {
    %c0_i32 = arith.constant 0 : i32
    %c0_i32_0 = arith.constant 0 : i32
    return %arg0, %c0_i32 : i32, i32
  }
}

</mosaic_0001>

<bundles_post_ra>
// kernel: sequence_instance_norm_2d.1
= control target key start
LH: loop header
LB: loop body
LE: loop exit
PB: predicated region body
PF: predicated region fallthrough
CT: control target
= control target key end

     0   :  { %s374_s0 = inlined_call_operand.vmem [shape: f32[64,256], index: 0, kind: input, shape index: {}]   ;;  %s375_s1 = inlined_call_operand.vmem [shape: f32[64,256], index: 1, kind: output, shape index: {}]  }
   0x1   :  { %v8_v0 = vld [vmem:[%s374_s0] sm:$0xff]  ;;  %v9_v1 = vld [vmem:[%s374_s0 + $0x8] sm:$0xff]  ;;  %v10_v5 = vld [vmem:[%s374_s0 + $0x10] sm:$0xff] }
   0x2   :  { %v12_v2 = vld [vmem:[%s374_s0 + $0x20] sm:$0xff]  ;;  %v24_v3 = vadd.f32 %v9_v1, %v8_v0  ;;  %v13_v4 = vld [vmem:[%s374_s0 + $0x28] sm:$0xff]  ;;  %v11_v6 = vld [vmem:[%s374_s0 + $0x18] sm:$0xff] }
   0x3   :  { %v30_v7 = vadd.f32 %v13_v4, %v12_v2  ;;  %v14_v8 = vld [vmem:[%s374_s0 + $0x30] sm:$0xff]  ;;  %v15_v9 = vld [vmem:[%s374_s0 + $0x38] sm:$0xff]  ;;  %v27_v10 = vadd.f32 %v11_v6, %v10_v5  ;;  %v16_v12 = vld [vmem:[%s374_s0 + $0x40] sm:$0xff] }
   0x4   :  { %25 = vadd.xlane.f32.xlu0 %v24_v3  ;;  %v33_v11 = vadd.f32 %v15_v9, %v14_v8  ;;  %v17_v13 = vld [vmem:[%s374_s0 + $0x48] sm:$0xff]  ;;  %v18_v14 = vld [vmem:[%s374_s0 + $0x50] sm:$0xff]  ;;  %v19_v15 = vld [vmem:[%s374_s0 + $0x58] sm:$0xff] }
   0x5   :  { %31 = vadd.xlane.f32.xlu1 %v30_v7  ;;  %v36_v16 = vadd.f32 %v17_v13, %v16_v12  ;;  %v39_v17 = vadd.f32 %v19_v15, %v18_v14  ;;  %v20_v18 = vld [vmem:[%s374_s0 + $0x60] sm:$0xff]  ;;  %v21_v19 = vld [vmem:[%s374_s0 + $0x68] sm:$0xff]  ;;  %v22_v20 = vld [vmem:[%s374_s0 + $0x70] sm:$0xff] }
   0x6   :  { %v23_v21 = vld [vmem:[%s374_s0 + $0x78] sm:$0xff]  ;;  %v42_v22 = vadd.f32 %v21_v19, %v20_v18 }
   0x7   :  { %v45_v23 = vadd.f32 %v23_v21, %v22_v20 }
   0x8   :  { %28 = vadd.xlane.f32.xlu0 %v27_v10 }
   0x9   :  { %34 = vadd.xlane.f32.xlu1 %v33_v11 }
   0xc   :  { %37 = vadd.xlane.f32.xlu0 %v36_v16 }
   0xd   :  { %40 = vadd.xlane.f32.xlu1 %v39_v17 }
  0x10   :  { %43 = vadd.xlane.f32.xlu0 %v42_v22 }
  0x11   :  { %46 = vadd.xlane.f32.xlu1 %v45_v23 }
  0x91   :  { %v26_v24 = vpop.xlane.xlu0 %25 }
  0x92   :  { %v48_v25 = vmul.f32 0.00390625, %v26_v24  ;;  %v32_v26 = vpop.xlane.xlu1 %31 }
  0x93   :  { %v50_v27 = vmul.f32 0.00390625, %v32_v26 }
  0x94   :  { %v246_v28 = vsub.f32 %v8_v0, %v48_v25  ;;  %v248_v29 = vsub.f32 %v9_v1, %v48_v25 }
  0x95   :  { %v250_v30 = vsub.f32 %v12_v2, %v50_v27  ;;  %v252_v31 = vsub.f32 %v13_v4, %v50_v27  ;;  %v29_v32 = vpop.xlane.xlu0 %28 }
  0x96   :  { %v49_v33 = vmul.f32 0.00390625, %v29_v32  ;;  %v35_v34 = vpop.xlane.xlu1 %34  ;;  %v72_v35 = vmul.f32 %v246_v28, %v246_v28  ;;  %v73_v36 = vmul.f32 %v248_v29, %v248_v29 }
  0x97   :  { %v51_v37 = vmul.f32 0.00390625, %v35_v34  ;;  %v76_v38 = vmul.f32 %v250_v30, %v250_v30  ;;  %v77_v39 = vmul.f32 %v252_v31, %v252_v31 }
  0x98   :  { %v262_v40 = vsub.f32 %v10_v5, %v49_v33  ;;  %v264_v41 = vsub.f32 %v11_v6, %v49_v33  ;;  %v88_v42 = vadd.f32 %v73_v36, %v72_v35 }
  0x99   :  { %v266_v43 = vsub.f32 %v14_v8, %v51_v37  ;;  %v268_v44 = vsub.f32 %v15_v9, %v51_v37  ;;  %v38_v45 = vpop.xlane.xlu0 %37  ;;  %v94_v48 = vadd.f32 %v77_v39, %v76_v38 }
  0x9a   :  { %v52_v46 = vmul.f32 0.00390625, %v38_v45  ;;  %89 = vadd.xlane.f32.xlu0 %v88_v42  ;;  %v41_v47 = vpop.xlane.xlu1 %40  ;;  %v74_v49 = vmul.f32 %v262_v40, %v262_v40  ;;  %v75_v50 = vmul.f32 %v264_v41, %v264_v41 }
  0x9b   :  { %v53_v51 = vmul.f32 0.00390625, %v41_v47  ;;  %v78_v52 = vmul.f32 %v266_v43, %v266_v43  ;;  %v79_v53 = vmul.f32 %v268_v44, %v268_v44 }
  0x9c   :  { %v278_v54 = vsub.f32 %v16_v12, %v52_v46  ;;  %v280_v55 = vsub.f32 %v17_v13, %v52_v46  ;;  %v91_v56 = vadd.f32 %v75_v50, %v74_v49 }
  0x9d   :  { %v282_v57 = vsub.f32 %v18_v14, %v53_v51  ;;  %v284_v58 = vsub.f32 %v19_v15, %v53_v51  ;;  %v44_v59 = vpop.xlane.xlu0 %43  ;;  %v97_v62 = vadd.f32 %v79_v53, %v78_v52 }
  0x9e   :  { %v54_v60 = vmul.f32 0.00390625, %v44_v59  ;;  %95 = vadd.xlane.f32.xlu0 %v94_v48  ;;  %92 = vadd.xlane.f32.xlu1 %v91_v56  ;;  %v47_v61 = vpop.xlane.xlu1 %46  ;;  %v80_v63 = vmul.f32 %v278_v54, %v278_v54  ;;  %v81_v0 = vmul.f32 %v280_v55, %v280_v55 }
  0x9f   :  { %v55_v1 = vmul.f32 0.00390625, %v47_v61  ;;  %v82_v2 = vmul.f32 %v282_v57, %v282_v57  ;;  %v83_v3 = vmul.f32 %v284_v58, %v284_v58 }
  0xa0   :  { %v294_v4 = vsub.f32 %v20_v18, %v54_v60  ;;  %v296_v5 = vsub.f32 %v21_v19, %v54_v60  ;;  %v100_v6 = vadd.f32 %v81_v0, %v80_v63 }
  0xa1   :  { %v298_v7 = vsub.f32 %v22_v20, %v55_v1  ;;  %v300_v8 = vsub.f32 %v23_v21, %v55_v1  ;;  %v103_v9 = vadd.f32 %v83_v3, %v82_v2 }
  0xa2   :  { %98 = vadd.xlane.f32.xlu1 %v97_v62  ;;  %101 = vadd.xlane.f32.xlu0 %v100_v6  ;;  %v84_v10 = vmul.f32 %v294_v4, %v294_v4  ;;  %v85_v11 = vmul.f32 %v296_v5, %v296_v5 }
  0xa3   :  { %v86_v12 = vmul.f32 %v298_v7, %v298_v7  ;;  %v87_v13 = vmul.f32 %v300_v8, %v300_v8 }
  0xa4   :  { %v106_v14 = vadd.f32 %v85_v11, %v84_v10 }
  0xa5   :  { %v109_v15 = vadd.f32 %v87_v13, %v86_v12 }
  0xa6   :  { %104 = vadd.xlane.f32.xlu1 %v103_v9  ;;  %107 = vadd.xlane.f32.xlu0 %v106_v14 }
  0xaa   :  { %110 = vadd.xlane.f32.xlu1 %v109_v15 }
 0x127   :  { %v90_v16 = vpop.xlane.xlu0 %89 }
 0x128   :  { %v112_v17 = vmul.f32 0.00390625, %v90_v16 }
 0x12a   :  { %v120_v18 = vadd.f32 1e-05, %v112_v17 }
 0x12b   :  { %v93_v19 = vpop.xlane.xlu1 %92  ;;  %v96_v20 = vpop.xlane.xlu0 %95 }
 0x12c   :  { %172 = vrsqrt.f32 %v120_v18  ;;  %v113_v21 = vmul.f32 0.00390625, %v93_v19  ;;  %v114_v22 = vmul.f32 0.00390625, %v96_v20 }
 0x12e   :  { %v121_v23 = vadd.f32 1e-05, %v113_v21  ;;  %v122_v24 = vadd.f32 1e-05, %v114_v22 }
 0x12f   :  { %v99_v25 = vpop.xlane.xlu1 %98  ;;  %v102_v26 = vpop.xlane.xlu0 %101 }
 0x130   :  { %174 = vrsqrt.f32 %v121_v23  ;;  %v115_v27 = vmul.f32 0.00390625, %v99_v25  ;;  %v116_v32 = vmul.f32 0.00390625, %v102_v26 }
 0x131   :  { %176 = vrsqrt.f32 %v122_v24 }
 0x132   :  { %v123_v33 = vadd.f32 1e-05, %v115_v27  ;;  %v124_v34 = vadd.f32 1e-05, %v116_v32 }
 0x133   :  { %v105_v35 = vpop.xlane.xlu1 %104  ;;  %v108_v36 = vpop.xlane.xlu0 %107 }
 0x134   :  { %178 = vrsqrt.f32 %v123_v33  ;;  %v117_v37 = vmul.f32 0.00390625, %v105_v35  ;;  %v118_v38 = vmul.f32 0.00390625, %v108_v36 }
 0x135   :  { %180 = vrsqrt.f32 %v124_v34 }
 0x136   :  { %v173_v39 = vpop.eup %172  ;;  %v125_v42 = vadd.f32 1e-05, %v117_v37  ;;  %v126_v45 = vadd.f32 1e-05, %v118_v38 }
 0x137   :  { %v136_v46 = vmul.f32 %v173_v39, %v246_v28  ;;  %v137_v47 = vmul.f32 %v173_v39, %v248_v29  ;;  %v111_v48 = vpop.xlane.xlu1 %110 }
 0x138   :  { %182 = vrsqrt.f32 %v125_v42  ;;  %v119_v49 = vmul.f32 0.00390625, %v111_v48 }
 0x139   :  { %152 = vst [vmem:[%s375_s1] sm:$0xff] %v136_v46  ;;  %153 = vst [vmem:[%s375_s1 + $0x8] sm:$0xff] %v137_v47  ;;  %184 = vrsqrt.f32 %v126_v45 }
 0x13a   :  { %v175_v50 = vpop.eup %174  ;;  %v127_v51 = vadd.f32 1e-05, %v119_v49 }
 0x13b   :  { %v177_v52 = vpop.eup %176  ;;  %v138_v53 = vmul.f32 %v175_v50, %v262_v40  ;;  %v139_v28 = vmul.f32 %v175_v50, %v264_v41 }
 0x13c   :  { %v140_v29 = vmul.f32 %v177_v52, %v250_v30  ;;  %v141_v56 = vmul.f32 %v177_v52, %v252_v31  ;;  %186 = vrsqrt.f32 %v127_v51 }
 0x13d   :  { %154 = vst [vmem:[%s375_s1 + $0x10] sm:$0xff] %v138_v53  ;;  %155 = vst [vmem:[%s375_s1 + $0x18] sm:$0xff] %v139_v28 }
 0x13e   :  { %v179_v59 = vpop.eup %178  ;;  %156 = vst [vmem:[%s375_s1 + $0x20] sm:$0xff] %v140_v29  ;;  %157 = vst [vmem:[%s375_s1 + $0x28] sm:$0xff] %v141_v56 }
 0x13f   :  { %v181_v30 = vpop.eup %180  ;;  %v142_v31 = vmul.f32 %v179_v59, %v266_v43  ;;  %v143_v40 = vmul.f32 %v179_v59, %v268_v44 }
 0x140   :  { %v144_v41 = vmul.f32 %v181_v30, %v278_v54  ;;  %v145_v60 = vmul.f32 %v181_v30, %v280_v55 }
 0x141   :  { %158 = vst [vmem:[%s375_s1 + $0x30] sm:$0xff] %v142_v31  ;;  %159 = vst [vmem:[%s375_s1 + $0x38] sm:$0xff] %v143_v40 }
 0x142   :  { %v183_v61 = vpop.eup %182  ;;  %160 = vst [vmem:[%s375_s1 + $0x40] sm:$0xff] %v144_v41  ;;  %161 = vst [vmem:[%s375_s1 + $0x48] sm:$0xff] %v145_v60 }
 0x143   :  { %v185_v43 = vpop.eup %184  ;;  %v146_v44 = vmul.f32 %v183_v61, %v282_v57  ;;  %v147_v54 = vmul.f32 %v183_v61, %v284_v58 }
 0x144   :  { %v148_v55 = vmul.f32 %v185_v43, %v294_v4  ;;  %v149_v62 = vmul.f32 %v185_v43, %v296_v5 }
 0x145   :  { %162 = vst [vmem:[%s375_s1 + $0x50] sm:$0xff] %v146_v44  ;;  %163 = vst [vmem:[%s375_s1 + $0x58] sm:$0xff] %v147_v54 }
 0x146   :  { %v187_v63 = vpop.eup %186  ;;  %164 = vst [vmem:[%s375_s1 + $0x60] sm:$0xff] %v148_v55  ;;  %165 = vst [vmem:[%s375_s1 + $0x68] sm:$0xff] %v149_v62 }
 0x147   :  { %v150_v57 = vmul.f32 %v187_v63, %v298_v7  ;;  %v151_v58 = vmul.f32 %v187_v63, %v300_v8 }
 0x149   :  { %166 = vst [vmem:[%s375_s1 + $0x70] sm:$0xff] %v150_v57  ;;  %167 = vst [vmem:[%s375_s1 + $0x78] sm:$0xff] %v151_v58 }

</bundles_post_ra>
